<compile_context>
chip_gen: v6e
topology: v6e:2x2x1
jax: 0.10.0
libtpu: 0.0.40
codegen_flags: <defaults>
</compile_context>

<pallas_src>
import math

import jax
import jax.numpy as jnp
from jax.experimental import pallas as pl
from jax.experimental.pallas import tpu as pltpu


def _shuffle_kernel(perm_ref, x_ref, o_ref):
    # perm_ref: (L,) int32 in SMEM (scalar-prefetched permutation of the L tokens)
    # x_ref, o_ref: (1, L, C) VMEM blocks (one batch element per grid step)
    _, L, C = x_ref.shape
    G = math.gcd(L, 8)  # rows per store group -> full-sublane (8,128) stores when L % 8 == 0

    for g in range(L // G):
        # Gather G permuted rows (dynamic sublane slices), then emit ONE dense store.
        rows = [x_ref[:, pl.ds(perm_ref[g * G + r], 1), :] for r in range(G)]
        tile = rows[0] if G == 1 else jnp.concatenate(rows, axis=1)  # (1, G, C)
        o_ref[:, g * G:(g + 1) * G, :] = tile


def shuffle(x_nhwc, perm=None, *, key=None, training=True):
    """Pallas implementation of Shuffle.forward.

    training=False -> identity (matches the PyTorch module's eval behavior).
    perm: optional precomputed permutation of length H*W (torch.randperm analog);
          drawn from `key` with jax.random.permutation if None.
    """
    if not training:
        return x_nhwc

    B, H, W, C = x_nhwc.shape
    L = H * W
    if perm is None:
        if key is None:
            key = jax.random.PRNGKey(0)
        perm = jax.random.permutation(key, L)
    perm = jnp.asarray(perm, jnp.int32)

    x = x_nhwc.reshape(B, L, C)

    out = pl.pallas_call(
        _shuffle_kernel,
        out_shape=jax.ShapeDtypeStruct((B, L, C), x.dtype),
        grid_spec=pltpu.PrefetchScalarGridSpec(
            num_scalar_prefetch=1,          # perm -> SMEM, visible to kernel + index_maps
            grid=(B,),
            in_specs=[pl.BlockSpec((1, L, C), lambda b, perm_ref: (b, 0, 0))],
            out_specs=pl.BlockSpec((1, L, C), lambda b, perm_ref: (b, 0, 0)),
        ),
        compiler_params=pltpu.CompilerParams(dimension_semantics=("parallel",)),
    )(perm, x)

    return out.reshape(B, H, W, C)


if __name__ == "__main__":
    # Small channels-last shapes consistent with the module: x is (B, H, W, C).
    B, H, W, C = 2, 8, 8, 128
    key = jax.random.PRNGKey(0)
    kx, kp = jax.random.split(key)

    x = jax.random.normal(kx, (B, H, W, C), jnp.float32)
    perm = jax.random.permutation(kp, H * W)      # analog of torch.randperm(H*W)

    out = jax.block_until_ready(shuffle(x, perm=perm, training=True))

    # Pure-JAX reference: x.reshape(B, -1, C)[:, perm, :].reshape(B, H, W, C)
    ref = x.reshape(B, H * W, C)[:, perm, :].reshape(B, H, W, C)
    assert out.shape == x.shape, f"shape mismatch: {out.shape} vs {x.shape}"
    assert bool(jnp.array_equal(out, ref)), "shuffle mismatch vs reference"

    # Eval-mode path is identity (no kernel), as in the PyTorch module.
    assert bool(jnp.array_equal(shuffle(x, training=False), x))

    print("KERNEL_OK")
</pallas_src>

<mosaic_0001>
module attributes {stable_mosaic.version = 11 : i64} {
  func.func @_shuffle_kernel(%arg0: i32, %arg1: memref<64xi32, #tpu.memory_space<smem>>, %arg2: memref<1x64x128xf32, #tpu.memory_space<vmem>>, %arg3: memref<1x64x128xf32, #tpu.memory_space<vmem>>) attributes {dimension_semantics = [#tpu.dimension_semantics<parallel>], iteration_bounds = array<i64: 2>, scalar_prefetch = 1 : i64, scratch_operands = 0 : i64, tpu.core_type = #tpu.core_type<tc>, window_params = [{transform_indices = @transform_0, window_bounds = array<i64: 1, 64, 128>}, {transform_indices = @transform_1, window_bounds = array<i64: 1, 64, 128>}]} {
    %c0 = arith.constant 0 : index
    %0 = memref.load %arg1[%c0] : memref<64xi32, #tpu.memory_space<smem>>
    %c0_0 = arith.constant 0 : index
    %1 = arith.index_cast %0 : i32 to index
    %c0_1 = arith.constant 0 : index
    %2 = vector.load %arg2[%c0_0, %1, %c0_1] : memref<1x64x128xf32, #tpu.memory_space<vmem>>, vector<1x1x128xf32>
    %c1 = arith.constant 1 : index
    %3 = memref.load %arg1[%c1] : memref<64xi32, #tpu.memory_space<smem>>
    %c0_2 = arith.constant 0 : index
    %4 = arith.index_cast %3 : i32 to index
    %c0_3 = arith.constant 0 : index
    %5 = vector.load %arg2[%c0_2, %4, %c0_3] : memref<1x64x128xf32, #tpu.memory_space<vmem>>, vector<1x1x128xf32>
    %c2 = arith.constant 2 : index
    %6 = memref.load %arg1[%c2] : memref<64xi32, #tpu.memory_space<smem>>
    %c0_4 = arith.constant 0 : index
    %7 = arith.index_cast %6 : i32 to index
    %c0_5 = arith.constant 0 : index
    %8 = vector.load %arg2[%c0_4, %7, %c0_5] : memref<1x64x128xf32, #tpu.memory_space<vmem>>, vector<1x1x128xf32>
    %c3 = arith.constant 3 : index
    %9 = memref.load %arg1[%c3] : memref<64xi32, #tpu.memory_space<smem>>
    %c0_6 = arith.constant 0 : index
    %10 = arith.index_cast %9 : i32 to index
    %c0_7 = arith.constant 0 : index
    %11 = vector.load %arg2[%c0_6, %10, %c0_7] : memref<1x64x128xf32, #tpu.memory_space<vmem>>, vector<1x1x128xf32>
    %c4 = arith.constant 4 : index
    %12 = memref.load %arg1[%c4] : memref<64xi32, #tpu.memory_space<smem>>
    %c0_8 = arith.constant 0 : index
    %13 = arith.index_cast %12 : i32 to index
    %c0_9 = arith.constant 0 : index
    %14 = vector.load %arg2[%c0_8, %13, %c0_9] : memref<1x64x128xf32, #tpu.memory_space<vmem>>, vector<1x1x128xf32>
    %c5 = arith.constant 5 : index
    %15 = memref.load %arg1[%c5] : memref<64xi32, #tpu.memory_space<smem>>
    %c0_10 = arith.constant 0 : index
    %16 = arith.index_cast %15 : i32 to index
    %c0_11 = arith.constant 0 : index
    %17 = vector.load %arg2[%c0_10, %16, %c0_11] : memref<1x64x128xf32, #tpu.memory_space<vmem>>, vector<1x1x128xf32>
    %c6 = arith.constant 6 : index
    %18 = memref.load %arg1[%c6] : memref<64xi32, #tpu.memory_space<smem>>
    %c0_12 = arith.constant 0 : index
    %19 = arith.index_cast %18 : i32 to index
    %c0_13 = arith.constant 0 : index
    %20 = vector.load %arg2[%c0_12, %19, %c0_13] : memref<1x64x128xf32, #tpu.memory_space<vmem>>, vector<1x1x128xf32>
    %c7 = arith.constant 7 : index
    %21 = memref.load %arg1[%c7] : memref<64xi32, #tpu.memory_space<smem>>
    %c0_14 = arith.constant 0 : index
    %22 = arith.index_cast %21 : i32 to index
    %c0_15 = arith.constant 0 : index
    %23 = vector.load %arg2[%c0_14, %22, %c0_15] : memref<1x64x128xf32, #tpu.memory_space<vmem>>, vector<1x1x128xf32>
    %24 = tpu.concatenate %2, %5, %8, %11, %14, %17, %20, %23 in 1 : vector<1x1x128xf32>, vector<1x1x128xf32>, vector<1x1x128xf32>, vector<1x1x128xf32>, vector<1x1x128xf32>, vector<1x1x128xf32>, vector<1x1x128xf32>, vector<1x1x128xf32> -> vector<1x8x128xf32>
    %c0_16 = arith.constant 0 : index
    %c0_17 = arith.constant 0 : index
    %c0_18 = arith.constant 0 : index
    %25 = vector.load %arg3[%c0_16, %c0_17, %c0_18] : memref<1x64x128xf32, #tpu.memory_space<vmem>>, vector<1x8x128xf32>
    tpu.vector_store %arg3[%c0_16, %c0_17, %c0_18], %24 {strides = array<i32>} : memref<1x64x128xf32, #tpu.memory_space<vmem>>, vector<1x8x128xf32>,
    %c8 = arith.constant 8 : index
    %26 = memref.load %arg1[%c8] : memref<64xi32, #tpu.memory_space<smem>>
    %c0_19 = arith.constant 0 : index
    %27 = arith.index_cast %26 : i32 to index
    %c0_20 = arith.constant 0 : index
    %28 = vector.load %arg2[%c0_19, %27, %c0_20] : memref<1x64x128xf32, #tpu.memory_space<vmem>>, vector<1x1x128xf32>
    %c9 = arith.constant 9 : index
    %29 = memref.load %arg1[%c9] : memref<64xi32, #tpu.memory_space<smem>>
    %c0_21 = arith.constant 0 : index
    %30 = arith.index_cast %29 : i32 to index
    %c0_22 = arith.constant 0 : index
    %31 = vector.load %arg2[%c0_21, %30, %c0_22] : memref<1x64x128xf32, #tpu.memory_space<vmem>>, vector<1x1x128xf32>
    %c10 = arith.constant 10 : index
    %32 = memref.load %arg1[%c10] : memref<64xi32, #tpu.memory_space<smem>>
    %c0_23 = arith.constant 0 : index
    %33 = arith.index_cast %32 : i32 to index
    %c0_24 = arith.constant 0 : index
    %34 = vector.load %arg2[%c0_23, %33, %c0_24] : memref<1x64x128xf32, #tpu.memory_space<vmem>>, vector<1x1x128xf32>
    %c11 = arith.constant 11 : index
    %35 = memref.load %arg1[%c11] : memref<64xi32, #tpu.memory_space<smem>>
    %c0_25 = arith.constant 0 : index
    %36 = arith.index_cast %35 : i32 to index
    %c0_26 = arith.constant 0 : index
    %37 = vector.load %arg2[%c0_25, %36, %c0_26] : memref<1x64x128xf32, #tpu.memory_space<vmem>>, vector<1x1x128xf32>
    %c12 = arith.constant 12 : index
    %38 = memref.load %arg1[%c12] : memref<64xi32, #tpu.memory_space<smem>>
    %c0_27 = arith.constant 0 : index
    %39 = arith.index_cast %38 : i32 to index
    %c0_28 = arith.constant 0 : index
    %40 = vector.load %arg2[%c0_27, %39, %c0_28] : memref<1x64x128xf32, #tpu.memory_space<vmem>>, vector<1x1x128xf32>
    %c13 = arith.constant 13 : index
    %41 = memref.load %arg1[%c13] : memref<64xi32, #tpu.memory_space<smem>>
    %c0_29 = arith.constant 0 : index
    %42 = arith.index_cast %41 : i32 to index
    %c0_30 = arith.constant 0 : index
    %43 = vector.load %arg2[%c0_29, %42, %c0_30] : memref<1x64x128xf32, #tpu.memory_space<vmem>>, vector<1x1x128xf32>
    %c14 = arith.constant 14 : index
    %44 = memref.load %arg1[%c14] : memref<64xi32, #tpu.memory_space<smem>>
    %c0_31 = arith.constant 0 : index
    %45 = arith.index_cast %44 : i32 to index
    %c0_32 = arith.constant 0 : index
    %46 = vector.load %arg2[%c0_31, %45, %c0_32] : memref<1x64x128xf32, #tpu.memory_space<vmem>>, vector<1x1x128xf32>
    %c15 = arith.constant 15 : index
    %47 = memref.load %arg1[%c15] : memref<64xi32, #tpu.memory_space<smem>>
    %c0_33 = arith.constant 0 : index
    %48 = arith.index_cast %47 : i32 to index
    %c0_34 = arith.constant 0 : index
    %49 = vector.load %arg2[%c0_33, %48, %c0_34] : memref<1x64x128xf32, #tpu.memory_space<vmem>>, vector<1x1x128xf32>
    %50 = tpu.concatenate %28, %31, %34, %37, %40, %43, %46, %49 in 1 : vector<1x1x128xf32>, vector<1x1x128xf32>, vector<1x1x128xf32>, vector<1x1x128xf32>, vector<1x1x128xf32>, vector<1x1x128xf32>, vector<1x1x128xf32>, vector<1x1x128xf32> -> vector<1x8x128xf32>
    %c0_35 = arith.constant 0 : index
    %c8_36 = arith.constant 8 : index
    %c0_37 = arith.constant 0 : index
    %51 = vector.load %arg3[%c0_35, %c8_36, %c0_37] : memref<1x64x128xf32, #tpu.memory_space<vmem>>, vector<1x8x128xf32>
    tpu.vector_store %arg3[%c0_35, %c8_36, %c0_37], %50 {strides = array<i32>} : memref<1x64x128xf32, #tpu.memory_space<vmem>>, vector<1x8x128xf32>,
    %c16 = arith.constant 16 : index
    %52 = memref.load %arg1[%c16] : memref<64xi32, #tpu.memory_space<smem>>
    %c0_38 = arith.constant 0 : index
    %53 = arith.index_cast %52 : i32 to index
    %c0_39 = arith.constant 0 : index
    %54 = vector.load %arg2[%c0_38, %53, %c0_39] : memref<1x64x128xf32, #tpu.memory_space<vmem>>, vector<1x1x128xf32>
    %c17 = arith.constant 17 : index
    %55 = memref.load %arg1[%c17] : memref<64xi32, #tpu.memory_space<smem>>
    %c0_40 = arith.constant 0 : index
    %56 = arith.index_cast %55 : i32 to index
    %c0_41 = arith.constant 0 : index
    %57 = vector.load %arg2[%c0_40, %56, %c0_41] : memref<1x64x128xf32, #tpu.memory_space<vmem>>, vector<1x1x128xf32>
    %c18 = arith.constant 18 : index
    %58 = memref.load %arg1[%c18] : memref<64xi32, #tpu.memory_space<smem>>
    %c0_42 = arith.constant 0 : index
    %59 = arith.index_cast %58 : i32 to index
    %c0_43 = arith.constant 0 : index
    %60 = vector.load %arg2[%c0_42, %59, %c0_43] : memref<1x64x128xf32, #tpu.memory_space<vmem>>, vector<1x1x128xf32>
    %c19 = arith.constant 19 : index
    %61 = memref.load %arg1[%c19] : memref<64xi32, #tpu.memory_space<smem>>
    %c0_44 = arith.constant 0 : index
    %62 = arith.index_cast %61 : i32 to index
    %c0_45 = arith.constant 0 : index
    %63 = vector.load %arg2[%c0_44, %62, %c0_45] : memref<1x64x128xf32, #tpu.memory_space<vmem>>, vector<1x1x128xf32>
    %c20 = arith.constant 20 : index
    %64 = memref.load %arg1[%c20] : memref<64xi32, #tpu.memory_space<smem>>
    %c0_46 = arith.constant 0 : index
    %65 = arith.index_cast %64 : i32 to index
    %c0_47 = arith.constant 0 : index
    %66 = vector.load %arg2[%c0_46, %65, %c0_47] : memref<1x64x128xf32, #tpu.memory_space<vmem>>, vector<1x1x128xf32>
    %c21 = arith.constant 21 : index
    %67 = memref.load %arg1[%c21] : memref<64xi32, #tpu.memory_space<smem>>
    %c0_48 = arith.constant 0 : index
    %68 = arith.index_cast %67 : i32 to index
    %c0_49 = arith.constant 0 : index
    %69 = vector.load %arg2[%c0_48, %68, %c0_49] : memref<1x64x128xf32, #tpu.memory_space<vmem>>, vector<1x1x128xf32>
    %c22 = arith.constant 22 : index
    %70 = memref.load %arg1[%c22] : memref<64xi32, #tpu.memory_space<smem>>
    %c0_50 = arith.constant 0 : index
    %71 = arith.index_cast %70 : i32 to index
    %c0_51 = arith.constant 0 : index
    %72 = vector.load %arg2[%c0_50, %71, %c0_51] : memref<1x64x128xf32, #tpu.memory_space<vmem>>, vector<1x1x128xf32>
    %c23 = arith.constant 23 : index
    %73 = memref.load %arg1[%c23] : memref<64xi32, #tpu.memory_space<smem>>
    %c0_52 = arith.constant 0 : index
    %74 = arith.index_cast %73 : i32 to index
    %c0_53 = arith.constant 0 : index
    %75 = vector.load %arg2[%c0_52, %74, %c0_53] : memref<1x64x128xf32, #tpu.memory_space<vmem>>, vector<1x1x128xf32>
    %76 = tpu.concatenate %54, %57, %60, %63, %66, %69, %72, %75 in 1 : vector<1x1x128xf32>, vector<1x1x128xf32>, vector<1x1x128xf32>, vector<1x1x128xf32>, vector<1x1x128xf32>, vector<1x1x128xf32>, vector<1x1x128xf32>, vector<1x1x128xf32> -> vector<1x8x128xf32>
    %c0_54 = arith.constant 0 : index
    %c16_55 = arith.constant 16 : index
    %c0_56 = arith.constant 0 : index
    %77 = vector.load %arg3[%c0_54, %c16_55, %c0_56] : memref<1x64x128xf32, #tpu.memory_space<vmem>>, vector<1x8x128xf32>
    tpu.vector_store %arg3[%c0_54, %c16_55, %c0_56], %76 {strides = array<i32>} : memref<1x64x128xf32, #tpu.memory_space<vmem>>, vector<1x8x128xf32>,
    %c24 = arith.constant 24 : index
    %78 = memref.load %arg1[%c24] : memref<64xi32, #tpu.memory_space<smem>>
    %c0_57 = arith.constant 0 : index
    %79 = arith.index_cast %78 : i32 to index
    %c0_58 = arith.constant 0 : index
    %80 = vector.load %arg2[%c0_57, %79, %c0_58] : memref<1x64x128xf32, #tpu.memory_space<vmem>>, vector<1x1x128xf32>
    %c25 = arith.constant 25 : index
    %81 = memref.load %arg1[%c25] : memref<64xi32, #tpu.memory_space<smem>>
    %c0_59 = arith.constant 0 : index
    %82 = arith.index_cast %81 : i32 to index
    %c0_60 = arith.constant 0 : index
    %83 = vector.load %arg2[%c0_59, %82, %c0_60] : memref<1x64x128xf32, #tpu.memory_space<vmem>>, vector<1x1x128xf32>
    %c26 = arith.constant 26 : index
    %84 = memref.load %arg1[%c26] : memref<64xi32, #tpu.memory_space<smem>>
    %c0_61 = arith.constant 0 : index
    %85 = arith.index_cast %84 : i32 to index
    %c0_62 = arith.constant 0 : index
    %86 = vector.load %arg2[%c0_61, %85, %c0_62] : memref<1x64x128xf32, #tpu.memory_space<vmem>>, vector<1x1x128xf32>
    %c27 = arith.constant 27 : index
    %87 = memref.load %arg1[%c27] : memref<64xi32, #tpu.memory_space<smem>>
    %c0_63 = arith.constant 0 : index
    %88 = arith.index_cast %87 : i32 to index
    %c0_64 = arith.constant 0 : index
    %89 = vector.load %arg2[%c0_63, %88, %c0_64] : memref<1x64x128xf32, #tpu.memory_space<vmem>>, vector<1x1x128xf32>
    %c28 = arith.constant 28 : index
    %90 = memref.load %arg1[%c28] : memref<64xi32, #tpu.memory_space<smem>>
    %c0_65 = arith.constant 0 : index
    %91 = arith.index_cast %90 : i32 to index
    %c0_66 = arith.constant 0 : index
    %92 = vector.load %arg2[%c0_65, %91, %c0_66] : memref<1x64x128xf32, #tpu.memory_space<vmem>>, vector<1x1x128xf32>
    %c29 = arith.constant 29 : index
    %93 = memref.load %arg1[%c29] : memref<64xi32, #tpu.memory_space<smem>>
    %c0_67 = arith.constant 0 : index
    %94 = arith.index_cast %93 : i32 to index
    %c0_68 = arith.constant 0 : index
    %95 = vector.load %arg2[%c0_67, %94, %c0_68] : memref<1x64x128xf32, #tpu.memory_space<vmem>>, vector<1x1x128xf32>
    %c30 = arith.constant 30 : index
    %96 = memref.load %arg1[%c30] : memref<64xi32, #tpu.memory_space<smem>>
    %c0_69 = arith.constant 0 : index
    %97 = arith.index_cast %96 : i32 to index
    %c0_70 = arith.constant 0 : index
    %98 = vector.load %arg2[%c0_69, %97, %c0_70] : memref<1x64x128xf32, #tpu.memory_space<vmem>>, vector<1x1x128xf32>
    %c31 = arith.constant 31 : index
    %99 = memref.load %arg1[%c31] : memref<64xi32, #tpu.memory_space<smem>>
    %c0_71 = arith.constant 0 : index
    %100 = arith.index_cast %99 : i32 to index
    %c0_72 = arith.constant 0 : index
    %101 = vector.load %arg2[%c0_71, %100, %c0_72] : memref<1x64x128xf32, #tpu.memory_space<vmem>>, vector<1x1x128xf32>
    %102 = tpu.concatenate %80, %83, %86, %89, %92, %95, %98, %101 in 1 : vector<1x1x128xf32>, vector<1x1x128xf32>, vector<1x1x128xf32>, vector<1x1x128xf32>, vector<1x1x128xf32>, vector<1x1x128xf32>, vector<1x1x128xf32>, vector<1x1x128xf32> -> vector<1x8x128xf32>
    %c0_73 = arith.constant 0 : index
    %c24_74 = arith.constant 24 : index
    %c0_75 = arith.constant 0 : index
    %103 = vector.load %arg3[%c0_73, %c24_74, %c0_75] : memref<1x64x128xf32, #tpu.memory_space<vmem>>, vector<1x8x128xf32>
    tpu.vector_store %arg3[%c0_73, %c24_74, %c0_75], %102 {strides = array<i32>} : memref<1x64x128xf32, #tpu.memory_space<vmem>>, vector<1x8x128xf32>,
    %c32 = arith.constant 32 : index
    %104 = memref.load %arg1[%c32] : memref<64xi32, #tpu.memory_space<smem>>
    %c0_76 = arith.constant 0 : index
    %105 = arith.index_cast %104 : i32 to index
    %c0_77 = arith.constant 0 : index
    %106 = vector.load %arg2[%c0_76, %105, %c0_77] : memref<1x64x128xf32, #tpu.memory_space<vmem>>, vector<1x1x128xf32>
    %c33 = arith.constant 33 : index
    %107 = memref.load %arg1[%c33] : memref<64xi32, #tpu.memory_space<smem>>
    %c0_78 = arith.constant 0 : index
    %108 = arith.index_cast %107 : i32 to index
    %c0_79 = arith.constant 0 : index
    %109 = vector.load %arg2[%c0_78, %108, %c0_79] : memref<1x64x128xf32, #tpu.memory_space<vmem>>, vector<1x1x128xf32>
    %c34 = arith.constant 34 : index
    %110 = memref.load %arg1[%c34] : memref<64xi32, #tpu.memory_space<smem>>
    %c0_80 = arith.constant 0 : index
    %111 = arith.index_cast %110 : i32 to index
    %c0_81 = arith.constant 0 : index
    %112 = vector.load %arg2[%c0_80, %111, %c0_81] : memref<1x64x128xf32, #tpu.memory_space<vmem>>, vector<1x1x128xf32>
    %c35 = arith.constant 35 : index
    %113 = memref.load %arg1[%c35] : memref<64xi32, #tpu.memory_space<smem>>
    %c0_82 = arith.constant 0 : index
    %114 = arith.index_cast %113 : i32 to index
    %c0_83 = arith.constant 0 : index
    %115 = vector.load %arg2[%c0_82, %114, %c0_83] : memref<1x64x128xf32, #tpu.memory_space<vmem>>, vector<1x1x128xf32>
    %c36 = arith.constant 36 : index
    %116 = memref.load %arg1[%c36] : memref<64xi32, #tpu.memory_space<smem>>
    %c0_84 = arith.constant 0 : index
    %117 = arith.index_cast %116 : i32 to index
    %c0_85 = arith.constant 0 : index
    %118 = vector.load %arg2[%c0_84, %117, %c0_85] : memref<1x64x128xf32, #tpu.memory_space<vmem>>, vector<1x1x128xf32>
    %c37 = arith.constant 37 : index
    %119 = memref.load %arg1[%c37] : memref<64xi32, #tpu.memory_space<smem>>
    %c0_86 = arith.constant 0 : index
    %120 = arith.index_cast %119 : i32 to index
    %c0_87 = arith.constant 0 : index
    %121 = vector.load %arg2[%c0_86, %120, %c0_87] : memref<1x64x128xf32, #tpu.memory_space<vmem>>, vector<1x1x128xf32>
    %c38 = arith.constant 38 : index
    %122 = memref.load %arg1[%c38] : memref<64xi32, #tpu.memory_space<smem>>
    %c0_88 = arith.constant 0 : index
    %123 = arith.index_cast %122 : i32 to index
    %c0_89 = arith.constant 0 : index
    %124 = vector.load %arg2[%c0_88, %123, %c0_89] : memref<1x64x128xf32, #tpu.memory_space<vmem>>, vector<1x1x128xf32>
    %c39 = arith.constant 39 : index
    %125 = memref.load %arg1[%c39] : memref<64xi32, #tpu.memory_space<smem>>
    %c0_90 = arith.constant 0 : index
    %126 = arith.index_cast %125 : i32 to index
    %c0_91 = arith.constant 0 : index
    %127 = vector.load %arg2[%c0_90, %126, %c0_91] : memref<1x64x128xf32, #tpu.memory_space<vmem>>, vector<1x1x128xf32>
    %128 = tpu.concatenate %106, %109, %112, %115, %118, %121, %124, %127 in 1 : vector<1x1x128xf32>, vector<1x1x128xf32>, vector<1x1x128xf32>, vector<1x1x128xf32>, vector<1x1x128xf32>, vector<1x1x128xf32>, vector<1x1x128xf32>, vector<1x1x128xf32> -> vector<1x8x128xf32>
    %c0_92 = arith.constant 0 : index
    %c32_93 = arith.constant 32 : index
    %c0_94 = arith.constant 0 : index
    %129 = vector.load %arg3[%c0_92, %c32_93, %c0_94] : memref<1x64x128xf32, #tpu.memory_space<vmem>>, vector<1x8x128xf32>
    tpu.vector_store %arg3[%c0_92, %c32_93, %c0_94], %128 {strides = array<i32>} : memref<1x64x128xf32, #tpu.memory_space<vmem>>, vector<1x8x128xf32>,
    %c40 = arith.constant 40 : index
    %130 = memref.load %arg1[%c40] : memref<64xi32, #tpu.memory_space<smem>>
    %c0_95 = arith.constant 0 : index
    %131 = arith.index_cast %130 : i32 to index
    %c0_96 = arith.constant 0 : index
    %132 = vector.load %arg2[%c0_95, %131, %c0_96] : memref<1x64x128xf32, #tpu.memory_space<vmem>>, vector<1x1x128xf32>
    %c41 = arith.constant 41 : index
    %133 = memref.load %arg1[%c41] : memref<64xi32, #tpu.memory_space<smem>>
    %c0_97 = arith.constant 0 : index
    %134 = arith.index_cast %133 : i32 to index
    %c0_98 = arith.constant 0 : index
    %135 = vector.load %arg2[%c0_97, %134, %c0_98] : memref<1x64x128xf32, #tpu.memory_space<vmem>>, vector<1x1x128xf32>
    %c42 = arith.constant 42 : index
    %136 = memref.load %arg1[%c42] : memref<64xi32, #tpu.memory_space<smem>>
    %c0_99 = arith.constant 0 : index
    %137 = arith.index_cast %136 : i32 to index
    %c0_100 = arith.constant 0 : index
    %138 = vector.load %arg2[%c0_99, %137, %c0_100] : memref<1x64x128xf32, #tpu.memory_space<vmem>>, vector<1x1x128xf32>
    %c43 = arith.constant 43 : index
    %139 = memref.load %arg1[%c43] : memref<64xi32, #tpu.memory_space<smem>>
    %c0_101 = arith.constant 0 : index
    %140 = arith.index_cast %139 : i32 to index
    %c0_102 = arith.constant 0 : index
    %141 = vector.load %arg2[%c0_101, %140, %c0_102] : memref<1x64x128xf32, #tpu.memory_space<vmem>>, vector<1x1x128xf32>
    %c44 = arith.constant 44 : index
    %142 = memref.load %arg1[%c44] : memref<64xi32, #tpu.memory_space<smem>>
    %c0_103 = arith.constant 0 : index
    %143 = arith.index_cast %142 : i32 to index
    %c0_104 = arith.constant 0 : index
    %144 = vector.load %arg2[%c0_103, %143, %c0_104] : memref<1x64x128xf32, #tpu.memory_space<vmem>>, vector<1x1x128xf32>
    %c45 = arith.constant 45 : index
    %145 = memref.load %arg1[%c45] : memref<64xi32, #tpu.memory_space<smem>>
    %c0_105 = arith.constant 0 : index
    %146 = arith.index_cast %145 : i32 to index
    %c0_106 = arith.constant 0 : index
    %147 = vector.load %arg2[%c0_105, %146, %c0_106] : memref<1x64x128xf32, #tpu.memory_space<vmem>>, vector<1x1x128xf32>
    %c46 = arith.constant 46 : index
    %148 = memref.load %arg1[%c46] : memref<64xi32, #tpu.memory_space<smem>>
    %c0_107 = arith.constant 0 : index
    %149 = arith.index_cast %148 : i32 to index
    %c0_108 = arith.constant 0 : index
    %150 = vector.load %arg2[%c0_107, %149, %c0_108] : memref<1x64x128xf32, #tpu.memory_space<vmem>>, vector<1x1x128xf32>
    %c47 = arith.constant 47 : index
    %151 = memref.load %arg1[%c47] : memref<64xi32, #tpu.memory_space<smem>>
    %c0_109 = arith.constant 0 : index
    %152 = arith.index_cast %151 : i32 to index
    %c0_110 = arith.constant 0 : index
    %153 = vector.load %arg2[%c0_109, %152, %c0_110] : memref<1x64x128xf32, #tpu.memory_space<vmem>>, vector<1x1x128xf32>
    %154 = tpu.concatenate %132, %135, %138, %141, %144, %147, %150, %153 in 1 : vector<1x1x128xf32>, vector<1x1x128xf32>, vector<1x1x128xf32>, vector<1x1x128xf32>, vector<1x1x128xf32>, vector<1x1x128xf32>, vector<1x1x128xf32>, vector<1x1x128xf32> -> vector<1x8x128xf32>
    %c0_111 = arith.constant 0 : index
    %c40_112 = arith.constant 40 : index
    %c0_113 = arith.constant 0 : index
    %155 = vector.load %arg3[%c0_111, %c40_112, %c0_113] : memref<1x64x128xf32, #tpu.memory_space<vmem>>, vector<1x8x128xf32>
    tpu.vector_store %arg3[%c0_111, %c40_112, %c0_113], %154 {strides = array<i32>} : memref<1x64x128xf32, #tpu.memory_space<vmem>>, vector<1x8x128xf32>,
    %c48 = arith.constant 48 : index
    %156 = memref.load %arg1[%c48] : memref<64xi32, #tpu.memory_space<smem>>
    %c0_114 = arith.constant 0 : index
    %157 = arith.index_cast %156 : i32 to index
    %c0_115 = arith.constant 0 : index
    %158 = vector.load %arg2[%c0_114, %157, %c0_115] : memref<1x64x128xf32, #tpu.memory_space<vmem>>, vector<1x1x128xf32>
    %c49 = arith.constant 49 : index
    %159 = memref.load %arg1[%c49] : memref<64xi32, #tpu.memory_space<smem>>
    %c0_116 = arith.constant 0 : index
    %160 = arith.index_cast %159 : i32 to index
    %c0_117 = arith.constant 0 : index
    %161 = vector.load %arg2[%c0_116, %160, %c0_117] : memref<1x64x128xf32, #tpu.memory_space<vmem>>, vector<1x1x128xf32>
    %c50 = arith.constant 50 : index
    %162 = memref.load %arg1[%c50] : memref<64xi32, #tpu.memory_space<smem>>
    %c0_118 = arith.constant 0 : index
    %163 = arith.index_cast %162 : i32 to index
    %c0_119 = arith.constant 0 : index
    %164 = vector.load %arg2[%c0_118, %163, %c0_119] : memref<1x64x128xf32, #tpu.memory_space<vmem>>, vector<1x1x128xf32>
    %c51 = arith.constant 51 : index
    %165 = memref.load %arg1[%c51] : memref<64xi32, #tpu.memory_space<smem>>
    %c0_120 = arith.constant 0 : index
    %166 = arith.index_cast %165 : i32 to index
    %c0_121 = arith.constant 0 : index
    %167 = vector.load %arg2[%c0_120, %166, %c0_121] : memref<1x64x128xf32, #tpu.memory_space<vmem>>, vector<1x1x128xf32>
    %c52 = arith.constant 52 : index
    %168 = memref.load %arg1[%c52] : memref<64xi32, #tpu.memory_space<smem>>
    %c0_122 = arith.constant 0 : index
    %169 = arith.index_cast %168 : i32 to index
    %c0_123 = arith.constant 0 : index
    %170 = vector.load %arg2[%c0_122, %169, %c0_123] : memref<1x64x128xf32, #tpu.memory_space<vmem>>, vector<1x1x128xf32>
    %c53 = arith.constant 53 : index
    %171 = memref.load %arg1[%c53] : memref<64xi32, #tpu.memory_space<smem>>
    %c0_124 = arith.constant 0 : index
    %172 = arith.index_cast %171 : i32 to index
    %c0_125 = arith.constant 0 : index
    %173 = vector.load %arg2[%c0_124, %172, %c0_125] : memref<1x64x128xf32, #tpu.memory_space<vmem>>, vector<1x1x128xf32>
    %c54 = arith.constant 54 : index
    %174 = memref.load %arg1[%c54] : memref<64xi32, #tpu.memory_space<smem>>
    %c0_126 = arith.constant 0 : index
    %175 = arith.index_cast %174 : i32 to index
    %c0_127 = arith.constant 0 : index
    %176 = vector.load %arg2[%c0_126, %175, %c0_127] : memref<1x64x128xf32, #tpu.memory_space<vmem>>, vector<1x1x128xf32>
    %c55 = arith.constant 55 : index
    %177 = memref.load %arg1[%c55] : memref<64xi32, #tpu.memory_space<smem>>
    %c0_128 = arith.constant 0 : index
    %178 = arith.index_cast %177 : i32 to index
    %c0_129 = arith.constant 0 : index
    %179 = vector.load %arg2[%c0_128, %178, %c0_129] : memref<1x64x128xf32, #tpu.memory_space<vmem>>, vector<1x1x128xf32>
    %180 = tpu.concatenate %158, %161, %164, %167, %170, %173, %176, %179 in 1 : vector<1x1x128xf32>, vector<1x1x128xf32>, vector<1x1x128xf32>, vector<1x1x128xf32>, vector<1x1x128xf32>, vector<1x1x128xf32>, vector<1x1x128xf32>, vector<1x1x128xf32> -> vector<1x8x128xf32>
    %c0_130 = arith.constant 0 : index
    %c48_131 = arith.constant 48 : index
    %c0_132 = arith.constant 0 : index
    %181 = vector.load %arg3[%c0_130, %c48_131, %c0_132] : memref<1x64x128xf32, #tpu.memory_space<vmem>>, vector<1x8x128xf32>
    tpu.vector_store %arg3[%c0_130, %c48_131, %c0_132], %180 {strides = array<i32>} : memref<1x64x128xf32, #tpu.memory_space<vmem>>, vector<1x8x128xf32>,
    %c56 = arith.constant 56 : index
    %182 = memref.load %arg1[%c56] : memref<64xi32, #tpu.memory_space<smem>>
    %c0_133 = arith.constant 0 : index
    %183 = arith.index_cast %182 : i32 to index
    %c0_134 = arith.constant 0 : index
    %184 = vector.load %arg2[%c0_133, %183, %c0_134] : memref<1x64x128xf32, #tpu.memory_space<vmem>>, vector<1x1x128xf32>
    %c57 = arith.constant 57 : index
    %185 = memref.load %arg1[%c57] : memref<64xi32, #tpu.memory_space<smem>>
    %c0_135 = arith.constant 0 : index
    %186 = arith.index_cast %185 : i32 to index
    %c0_136 = arith.constant 0 : index
    %187 = vector.load %arg2[%c0_135, %186, %c0_136] : memref<1x64x128xf32, #tpu.memory_space<vmem>>, vector<1x1x128xf32>
    %c58 = arith.constant 58 : index
    %188 = memref.load %arg1[%c58] : memref<64xi32, #tpu.memory_space<smem>>
    %c0_137 = arith.constant 0 : index
    %189 = arith.index_cast %188 : i32 to index
    %c0_138 = arith.constant 0 : index
    %190 = vector.load %arg2[%c0_137, %189, %c0_138] : memref<1x64x128xf32, #tpu.memory_space<vmem>>, vector<1x1x128xf32>
    %c59 = arith.constant 59 : index
    %191 = memref.load %arg1[%c59] : memref<64xi32, #tpu.memory_space<smem>>
    %c0_139 = arith.constant 0 : index
    %192 = arith.index_cast %191 : i32 to index
    %c0_140 = arith.constant 0 : index
    %193 = vector.load %arg2[%c0_139, %192, %c0_140] : memref<1x64x128xf32, #tpu.memory_space<vmem>>, vector<1x1x128xf32>
    %c60 = arith.constant 60 : index
    %194 = memref.load %arg1[%c60] : memref<64xi32, #tpu.memory_space<smem>>
    %c0_141 = arith.constant 0 : index
    %195 = arith.index_cast %194 : i32 to index
    %c0_142 = arith.constant 0 : index
    %196 = vector.load %arg2[%c0_141, %195, %c0_142] : memref<1x64x128xf32, #tpu.memory_space<vmem>>, vector<1x1x128xf32>
    %c61 = arith.constant 61 : index
    %197 = memref.load %arg1[%c61] : memref<64xi32, #tpu.memory_space<smem>>
    %c0_143 = arith.constant 0 : index
    %198 = arith.index_cast %197 : i32 to index
    %c0_144 = arith.constant 0 : index
    %199 = vector.load %arg2[%c0_143, %198, %c0_144] : memref<1x64x128xf32, #tpu.memory_space<vmem>>, vector<1x1x128xf32>
    %c62 = arith.constant 62 : index
    %200 = memref.load %arg1[%c62] : memref<64xi32, #tpu.memory_space<smem>>
    %c0_145 = arith.constant 0 : index
    %201 = arith.index_cast %200 : i32 to index
    %c0_146 = arith.constant 0 : index
    %202 = vector.load %arg2[%c0_145, %201, %c0_146] : memref<1x64x128xf32, #tpu.memory_space<vmem>>, vector<1x1x128xf32>
    %c63 = arith.constant 63 : index
    %203 = memref.load %arg1[%c63] : memref<64xi32, #tpu.memory_space<smem>>
    %c0_147 = arith.constant 0 : index
    %204 = arith.index_cast %203 : i32 to index
    %c0_148 = arith.constant 0 : index
    %205 = vector.load %arg2[%c0_147, %204, %c0_148] : memref<1x64x128xf32, #tpu.memory_space<vmem>>, vector<1x1x128xf32>
    %206 = tpu.concatenate %184, %187, %190, %193, %196, %199, %202, %205 in 1 : vector<1x1x128xf32>, vector<1x1x128xf32>, vector<1x1x128xf32>, vector<1x1x128xf32>, vector<1x1x128xf32>, vector<1x1x128xf32>, vector<1x1x128xf32>, vector<1x1x128xf32> -> vector<1x8x128xf32>
    %c0_149 = arith.constant 0 : index
    %c56_150 = arith.constant 56 : index
    %c0_151 = arith.constant 0 : index
    %207 = vector.load %arg3[%c0_149, %c56_150, %c0_151] : memref<1x64x128xf32, #tpu.memory_space<vmem>>, vector<1x8x128xf32>
    tpu.vector_store %arg3[%c0_149, %c56_150, %c0_151], %206 {strides = array<i32>} : memref<1x64x128xf32, #tpu.memory_space<vmem>>, vector<1x8x128xf32>,
    return
  }
  func.func @transform_0(%arg0: i32, %arg1: memref<64xi32, #tpu.memory_space<smem>>) -> (i32, i32, i32) {
    %c0_i32 = arith.constant 0 : i32
    %c0_i32_0 = arith.constant 0 : i32
    %c0_i32_1 = arith.constant 0 : i32
    return %arg0, %c0_i32, %c0_i32_0 : i32, i32, i32
  }
  func.func @transform_1(%arg0: i32, %arg1: memref<64xi32, #tpu.memory_space<smem>>) -> (i32, i32, i32) {
    %c0_i32 = arith.constant 0 : i32
    %c0_i32_0 = arith.constant 0 : i32
    %c0_i32_1 = arith.constant 0 : i32
    return %arg0, %c0_i32, %c0_i32_0 : i32, i32, i32
  }
}

</mosaic_0001>

<bundles_post_ra>
// kernel: tpu_custom_call.1
= control target key start
LH: loop header
LB: loop body
LE: loop exit
PB: predicated region body
PF: predicated region fallthrough
CT: control target
= control target key end

     0   :  { %s956_s9 = smov [#allocation3]   ;;  %s1434_s0 = inlined_call_operand.hbm [shape: s32[64], index: 0, kind: input, shape index: {}]   ;;  %s1435_s1 = inlined_call_operand.hbm [shape: f32[2,64,128], index: 1, kind: input, shape index: {}]   ;;  %s1436_s2 = inlined_call_operand.hbm [shape: f32[2,64,128], index: 2, kind: output, shape index: {}]  }
   0x1   :  { %8 = dma.hbm_to_smem %s1434_s0, 16, %s956_s9, [#allocation2] }
   0x2   :  { %930 = dma.done.wait [#allocation2], 16 }
   0x3   :  { %931 = vsyncadd [#allocation2], 4294967280 }
   0x4   :  { %10 = sfence }
   0x5   :  { %11 = vsyncpa [#allocation5], 0 }
   0x6   :  { %13 = vsyncpa [#allocation5 + $0x1], 0 }
   0x7   :  { %14 = vsyncpa [#allocation6], 0 }
   0x8   :  { %16 = vsyncpa [#allocation6 + $0x1], 0  ;;  %s981_s12 = smov 0   ;;  %s983_s13 = smov 0  }
   0x9   :  { %s985_s14 = smov 0   ;;  %s987_s15 = smov 0  }
   0xa LB: > { %s1002_s0 = sadd.s32 4294967295, %s954_s15   ;;  %s722_s16 = sadd.s32 4294967294, %s954_s15   ;;  %s954_s15 = sphi %s987_s15, %s1451_s15   ;;  %s950_s14 = sphi %s985_s14, %s1450_s14   ;;  %s946_s13 = sphi %s983_s13, %s1449_s13   ;;  %s942_s12 = sphi %s981_s12, %s1448_s12  }
   0xb   : > { %s1006_s17 = sadd.s32 1, %s954_s15   ;;  %s29_s18 = sadd.s32 1, %s950_s14 }
   0xc   : > { %s26_s19 = ssub.s32 %s954_s15, %s1006_s17  ;;  %p36_p0 = scmp.ne.s32.totalorder %s950_s14, %s946_s13 }
   0xd   : > { %p27_p1 = scmp.eq.s32.totalorder %s26_s19, 0  ;;  %p37_p2 = scmp.eq.s32.totalorder %s954_s15, 0 }
   0xe   : > { %p42_p3 = scmp.ne.s32.totalorder %s946_s13, %s942_s12  ;;  %p43_p4 = scmp.eq.s32.totalorder %s1002_s0, 0 }
   0xf   : > { %s1018_s20 = scalar_select %p27_p1, %s950_s14, %s29_s18  }
  0x10   : > { %p1020_p5 = por %p37_p2, %p36_p0  ;;  %p1024_p6 = por %p43_p4, %p42_p3 }
  0x11   : > { %p66_p7 = scmp.eq.s32.totalorder %s1002_s0, 1  ;;  %p72_p8 = scmp.eq.s32.totalorder %s722_s16, 1 }
  0x12   : > { %s1440_s22 = scalar_select %p1024_p6, 1, 0 }
  0x13   : > { %p813_p10 = scmp.lt.s32.totalorder %s954_s15, 2  ;;  %p1031_p11 = por %p66_p7, %p36_p0 }
  0x14   : > { %p1035_p12 = por %p72_p8, %p42_p3  ;;  %s92_s25 = sand.u32 1, %s950_s14  }
  0x15   : > { %s1441_s23 = scalar_select %p1031_p11, 1, 0 }
  0x16   : > { %s1442_s24 = scalar_select %p1035_p12, 1, 0 }
  0x17   : > { %s799_s26 = sshll.u32 %s954_s15, 10  ;;  %s725_s27 = sshll.u32 %s92_s25, 6 }
  0x18   : > { %s1044_s30 = scalar_lea.hbm %s1435_s1, %s799_s26  ;;  %s96_s3 = scalar_lea.vmem [#allocation4], %s725_s27 }
  0x19   : > { %s103_s4 = sshll.u32 %s96_s3, 4  ;;  %p1048_p13 = pnand %p813_p10, %p1020_p5  ;;  %s1052_s4 = int_to_ptr.vmem [resolvable:$true] %s103_s4 }
  0x1a   : > { %s1054_s6 = scalar_lea.sflag [#allocation5], %s92_s25  ;;  %s860_s7 = scalar_lea.hbm %s1044_s30, 1024 }
  0x1b   : > { %p861_p0 = scmp.ne.s32.totalorder %s1044_s30, %s860_s7  ;;  %p862_p1 = pneg %p1048_p13 }
  0x1c   : > { %s865_s10 = scalar_lea.hbm %s1435_s1, 2048  ;;  %p866_p4 = scmp.lt.s32.totalorder %s1044_s30, %s1435_s1 }
  0x1d   : > { %p863_p2 = pnand %p862_p1, %p861_p0  ;;  %p867_p5 = scmp.lt.s32.totalorder %s865_s10, %s860_s7 }
  0x1f   : > { %p864_p3 = pneg %p863_p2  ;;  %p868_p7 = por %p867_p5, %p866_p4 }
  0x21   : > { %p869_p8 = pnand %p868_p7, %p864_p3 }
  0x23   : > { %872 = shalt.err (!%p869_p8)
}
  0x24   : > { %s873_s18 = scalar_lea.vmem %s1052_s4, 1024  ;;  %s957_s19 = smov [#allocation4]  }
  0x25   : > { %p874_p10 = scmp.ne.s32.totalorder %s1052_s4, %s873_s18  ;;  %s878_s21 = sshll.u32 %s957_s19, 4  ;;  %s879_s21 = int_to_ptr.vmem [resolvable:$false] %s878_s21 }
  0x26   : > { %s880_s25 = scalar_lea.vmem %s879_s21, 2048  ;;  %p881_p2 = scmp.lt.s32.totalorder %s1052_s4, %s879_s21 }
  0x27   : > { %p876_p9 = pnand %p874_p10, %p862_p1  ;;  %p882_p12 = scmp.lt.s32.totalorder %s880_s25, %s873_s18 }
  0x29   : > { %p877_p0 = pneg %p876_p9  ;;  %p883_p11 = por %p882_p12, %p881_p2 }
  0x2b   : > { %p884_p6 = pnand %p883_p11, %p877_p0 }
  0x2d   : > { %887 = shalt.err (!%p884_p6)
}
  0x2e   : > { %s958_s26 = smov 128   ;;  %s959_s27 = smov 8  }
  0x2f   : > { %808 = dma.hbm_to_vmem [thread:$0]  (!%p1048_p13), %s1044_s30, 1024, %s1052_s4, %s1054_s6, %s958_s26, %s958_s26, %s959_s27  }
  0x30   : > { %p728_p9 = scmp.ge.s32.totalorder %s954_s15, 1  ;;  %p111_p1 = scmp.lt.s32.totalorder %s954_s15, 3 }
  0x32   : > { %p112_p3 = pnand %p728_p9, %p111_p1 }
  0x33   : > { %s1078_s28 = sand.u32 (!%p112_p3), 1, %s946_s13   ;;  %p1444_p6 = scmp.ne.s32.totalorder (!%p112_p3), %s1440_s22, 0 }
  0x34   : > { %115 = sbr.rel (%p112_p3) target bundleno = 151 (0x97), region = 24  ;;  %s729_s29 = sshll.u32 (!%p112_p3), %s1078_s28, 6 }
  0x35   : > { %s118_s3 = scalar_lea.sflag (!%p112_p3), [#allocation5], %s1078_s28  ;;  %s1084_s7 = scalar_lea.vmem (!%p112_p3), [#allocation4], %s729_s29 }
  0x39   : > { %933 = dma.done.wait (%p1444_p6), %s118_s3, 1024  }
  0x3a   : > { %935 = vsyncadd (%p1444_p6), %s118_s3, 4294966272  ;;  %s140_s30 = sld [smem:[#allocation3]]  ;;  %vm185_vm0 = vcmask 1040384   ;;  %vm187_vm1 = vcmask 1041408   ;;  %vm189_vm2 = vcmask 1042432   ;;  %vm191_vm3 = vcmask 1043456  }
  0x3b   : > { %s731_s4 = sld [smem:[#allocation3 + $0x1]]  ;;  %vm193_vm4 = vcmask 1044480   ;;  %vm195_vm5 = vcmask 1045504   ;;  %vm197_vm6 = vcmask 1046528   ;;  %p1445_p12 = scmp.ne.s32.totalorder %s1441_s23, 0 }
  0x3c   : > { %s732_s5 = sld [smem:[#allocation3 + $0x2]] }
  0x3d   : > { %s733_s6 = sld [smem:[#allocation3 + $0x3]] }
  0x3e   : > { %s734_s8 = sld [smem:[#allocation3 + $0x4]] }
  0x3f   : > { %s735_s9 = sld [smem:[#allocation3 + $0x5]] }
  0x40   : > { %s141_s10 = scalar_lea.vmem %s1084_s7, %s140_s30 [#allocation4]  ;;  %s1091_s11 = sld [smem:[#allocation3 + $0x6]] }
  0x41   : > { %s144_s16 = scalar_lea.vmem %s1084_s7, %s731_s4 [#allocation4]  ;;  %s1094_s18 = sld [smem:[#allocation3 + $0x7]]  ;;  %v142_v0 = vld [vmem:[%s141_s10] sm:$0x1] }
  0x42   : > { %v145_v1 = vld [vmem:[%s144_s16] sm:$0x1]  ;;  %s147_s22 = scalar_lea.vmem %s1084_s7, %s732_s5 [#allocation4]  ;;  %s1097_s19 = sld [smem:[#allocation3 + $0x8]] }
  0x43   : > { %v148_v2 = vld [vmem:[%s147_s22] sm:$0x1]  ;;  %s150_s21 = scalar_lea.vmem %s1084_s7, %s733_s6 [#allocation4]  ;;  %v165_v3 = vrot.slane %v145_v1, 7  ;;  %s1100_s25 = sld [smem:[#allocation3 + $0x9]] }
  0x44   : > { %v151_v4 = vld [vmem:[%s150_s21] sm:$0x1]  ;;  %s153_s26 = scalar_lea.vmem %s1084_s7, %s734_s8 [#allocation4]  ;;  %v168_v5 = vrot.slane %v148_v2, 6  ;;  %s1103_s27 = sld [smem:[#allocation3 + $0xa]] }
  0x45   : > { %v154_v6 = vld [vmem:[%s153_s26] sm:$0x1]  ;;  %s156_s3 = scalar_lea.vmem %s1084_s7, %s735_s9 [#allocation4]  ;;  %v171_v7 = vrot.slane %v151_v4, 5  ;;  %v186_v8 = vsel %vm185_vm0, %v142_v0, %v165_v3  ;;  %s1107_s30 = sld [smem:[#allocation3 + $0xb]] }
  0x46   : > { %v157_v9 = vld [vmem:[%s156_s3] sm:$0x1]  ;;  %s159_s4 = scalar_lea.vmem %s1084_s7, %s1091_s11 [#allocation4]  ;;  %v174_v10 = vrot.slane %v154_v6, 4  ;;  %v188_v11 = vsel %vm187_vm1, %v186_v8, %v168_v5  ;;  %s1112_s5 = sld [smem:[#allocation3 + $0xc]] }
  0x47   : > { %v160_v12 = vld [vmem:[%s159_s4] sm:$0x1]  ;;  %s162_s6 = scalar_lea.vmem %s1084_s7, %s1094_s18 [#allocation4]  ;;  %v177_v13 = vrot.slane %v157_v9, 3  ;;  %v190_v14 = vsel %vm189_vm2, %v188_v11, %v171_v7  ;;  %s1117_s8 = sld [smem:[#allocation3 + $0xd]] }
  0x48   : > { %v163_v15 = vld [vmem:[%s162_s6] sm:$0x1]  ;;  %v180_v16 = vrot.slane %v160_v12, 2  ;;  %v192_v17 = vsel %vm191_vm3, %v190_v14, %v174_v10  ;;  %s201_s9 = scalar_lea.vmem %s1084_s7, %s1097_s19 [#allocation4]  ;;  %s1122_s10 = sld [smem:[#allocation3 + $0xe]] }
  0x49   : > { %v183_v18 = vrot.slane %v163_v15, 1  ;;  %v194_v19 = vsel %vm193_vm4, %v192_v17, %v177_v13  ;;  %s204_s11 = scalar_lea.vmem %s1084_s7, %s1100_s25 [#allocation4]  ;;  %s1127_s16 = sld [smem:[#allocation3 + $0xf]]  ;;  %v202_v21 = vld [vmem:[%s201_s9] sm:$0x1] }
  0x4a   : > { %v196_v20 = vsel %vm195_vm5, %v194_v19, %v180_v16  ;;  %v205_v22 = vld [vmem:[%s204_s11] sm:$0x1]  ;;  %s207_s18 = scalar_lea.vmem %s1084_s7, %s1103_s27 [#allocation4]  ;;  %s1132_s22 = sld [smem:[#allocation3 + $0x10]] }
  0x4b   : > { %v198_v23 = vsel %vm197_vm6, %v196_v20, %v183_v18  ;;  %v208_v24 = vld [vmem:[%s207_s18] sm:$0x1]  ;;  %s210_s19 = scalar_lea.vmem %s1084_s7, %s1107_s30 [#allocation4]  ;;  %v225_v25 = vrot.slane %v205_v22, 7  ;;  %s1137_s21 = sld [smem:[#allocation3 + $0x11]] }
  0x4c   : > { %s1141_s25 = scalar_lea.vmem [#allocation7], %s729_s29  ;;  %v211_v26 = vld [vmem:[%s210_s19] sm:$0x1]  ;;  %s213_s26 = scalar_lea.vmem %s1084_s7, %s1112_s5 [#allocation4]  ;;  %v228_v27 = vrot.slane %v208_v24, 6 }
  0x4d   : > { %199 = vst [vmem:[%s1141_s25] sm:$0xff] %v198_v23  ;;  %s1146_s27 = sld [smem:[#allocation3 + $0x12]]  ;;  %v214_v28 = vld [vmem:[%s213_s26] sm:$0x1]  ;;  %s216_s3 = scalar_lea.vmem %s1084_s7, %s1117_s8 [#allocation4]  ;;  %v231_v29 = vrot.slane %v211_v26, 5  ;;  %v245_v30 = vsel %vm185_vm0, %v202_v21, %v225_v25 }
  0x4e   : > { %s1151_s30 = sld [smem:[#allocation3 + $0x13]]  ;;  %v217_v31 = vld [vmem:[%s216_s3] sm:$0x1]  ;;  %s219_s29 = scalar_lea.vmem %s1084_s7, %s1122_s10 [#allocation4]  ;;  %v234_v32 = vrot.slane %v214_v28, 4  ;;  %v246_v33 = vsel %vm187_vm1, %v245_v30, %v228_v27 }
  0x4f   : > { %s1156_s4 = sld [smem:[#allocation3 + $0x14]]  ;;  %v220_v34 = vld [vmem:[%s219_s29] sm:$0x1]  ;;  %s222_s5 = scalar_lea.vmem %s1084_s7, %s1127_s16 [#allocation4]  ;;  %v237_v35 = vrot.slane %v217_v31, 3  ;;  %v247_v36 = vsel %vm189_vm2, %v246_v33, %v231_v29 }
  0x50   : > { %s1161_s6 = sld [smem:[#allocation3 + $0x15]]  ;;  %v223_v37 = vld [vmem:[%s222_s5] sm:$0x1]  ;;  %v240_v38 = vrot.slane %v220_v34, 2  ;;  %v248_v39 = vsel %vm191_vm3, %v247_v36, %v234_v32  ;;  %s254_s8 = scalar_lea.vmem %s1084_s7, %s1132_s22 [#allocation4] }
  0x51   : > { %s1166_s9 = sld [smem:[#allocation3 + $0x16]]  ;;  %v243_v40 = vrot.slane %v223_v37, 1  ;;  %v249_v41 = vsel %vm193_vm4, %v248_v39, %v237_v35  ;;  %s257_s10 = scalar_lea.vmem %s1084_s7, %s1137_s21 [#allocation4]  ;;  %v255_v43 = vld [vmem:[%s254_s8] sm:$0x1] }
  0x52   : > { %s1171_s11 = sld [smem:[#allocation3 + $0x17]]  ;;  %v250_v42 = vsel %vm195_vm5, %v249_v41, %v240_v38  ;;  %v258_v44 = vld [vmem:[%s257_s10] sm:$0x1] }
  0x53   : > { %s260_s16 = scalar_lea.vmem %s1084_s7, %s1146_s27 [#allocation4]  ;;  %s1176_s18 = sld [smem:[#allocation3 + $0x18]]  ;;  %v251_v45 = vsel %vm197_vm6, %v250_v42, %v243_v40  ;;  %v278_v47 = vrot.slane %v258_v44, 7 }
  0x54   : > { %v261_v46 = vld [vmem:[%s260_s16] sm:$0x1]  ;;  %s263_s22 = scalar_lea.vmem %s1084_s7, %s1151_s30 [#allocation4]  ;;  %s1181_s19 = sld [smem:[#allocation3 + $0x19]]  ;;  %252 = vst [vmem:[%s1141_s25 + $0x8] sm:$0xff] %v251_v45 }
  0x55   : > { %v264_v48 = vld [vmem:[%s263_s22] sm:$0x1]  ;;  %s266_s21 = scalar_lea.vmem %s1084_s7, %s1156_s4 [#allocation4]  ;;  %v281_v49 = vrot.slane %v261_v46, 6  ;;  %s1186_s26 = sld [smem:[#allocation3 + $0x1a]]  ;;  %v298_v52 = vsel %vm185_vm0, %v255_v43, %v278_v47 }
  0x56   : > { %v267_v50 = vld [vmem:[%s266_s21] sm:$0x1]  ;;  %s269_s27 = scalar_lea.vmem %s1084_s7, %s1161_s6 [#allocation4]  ;;  %v284_v51 = vrot.slane %v264_v48, 5  ;;  %s1191_s3 = sld [smem:[#allocation3 + $0x1b]] }
  0x57   : > { %v270_v53 = vld [vmem:[%s269_s27] sm:$0x1]  ;;  %s272_s30 = scalar_lea.vmem %s1084_s7, %s1166_s9 [#allocation4]  ;;  %v287_v54 = vrot.slane %v267_v50, 4  ;;  %v299_v55 = vsel %vm187_vm1, %v298_v52, %v281_v49  ;;  %s1196_s29 = sld [smem:[#allocation3 + $0x1c]] }
  0x58   : > { %v273_v56 = vld [vmem:[%s272_s30] sm:$0x1]  ;;  %s275_s4 = scalar_lea.vmem %s1084_s7, %s1171_s11 [#allocation4]  ;;  %v290_v57 = vrot.slane %v270_v53, 3  ;;  %v300_v58 = vsel %vm189_vm2, %v299_v55, %v284_v51  ;;  %s1201_s5 = sld [smem:[#allocation3 + $0x1d]] }
  0x59   : > { %v276_v59 = vld [vmem:[%s275_s4] sm:$0x1]  ;;  %v293_v60 = vrot.slane %v273_v56, 2  ;;  %v301_v61 = vsel %vm191_vm3, %v300_v58, %v287_v54  ;;  %s307_s6 = scalar_lea.vmem %s1084_s7, %s1176_s18 [#allocation4]  ;;  %s1206_s8 = sld [smem:[#allocation3 + $0x1e]] }
  0x5a   : > { %v296_v62 = vrot.slane %v276_v59, 1  ;;  %v302_v63 = vsel %vm193_vm4, %v301_v61, %v290_v57  ;;  %s310_s9 = scalar_lea.vmem %s1084_s7, %s1181_s19 [#allocation4]  ;;  %s1211_s10 = sld [smem:[#allocation3 + $0x1f]]  ;;  %v308_v1 = vld [vmem:[%s307_s6] sm:$0x1] }
  0x5b   : > { %v303_v0 = vsel %vm195_vm5, %v302_v63, %v293_v60  ;;  %v311_v2 = vld [vmem:[%s310_s9] sm:$0x1]  ;;  %s313_s11 = scalar_lea.vmem %s1084_s7, %s1186_s26 [#allocation4]  ;;  %s1216_s16 = sld [smem:[#allocation3 + $0x20]] }
  0x5c   : > { %v304_v3 = vsel %vm197_vm6, %v303_v0, %v296_v62  ;;  %v314_v4 = vld [vmem:[%s313_s11] sm:$0x1]  ;;  %s316_s18 = scalar_lea.vmem %s1084_s7, %s1191_s3 [#allocation4]  ;;  %v331_v5 = vrot.slane %v311_v2, 7  ;;  %s1221_s22 = sld [smem:[#allocation3 + $0x21]] }
  0x5d   : > { %305 = vst [vmem:[%s1141_s25 + $0x10] sm:$0xff] %v304_v3  ;;  %v317_v6 = vld [vmem:[%s316_s18] sm:$0x1]  ;;  %s319_s19 = scalar_lea.vmem %s1084_s7, %s1196_s29 [#allocation4]  ;;  %v334_v7 = vrot.slane %v314_v4, 6  ;;  %s1226_s21 = sld [smem:[#allocation3 + $0x22]] }
  0x5e   : > { %v320_v8 = vld [vmem:[%s319_s19] sm:$0x1]  ;;  %s322_s26 = scalar_lea.vmem %s1084_s7, %s1201_s5 [#allocation4]  ;;  %v337_v9 = vrot.slane %v317_v6, 5  ;;  %v351_v10 = vsel %vm185_vm0, %v308_v1, %v331_v5  ;;  %s1231_s27 = sld [smem:[#allocation3 + $0x23]] }
  0x5f   : > { %v323_v11 = vld [vmem:[%s322_s26] sm:$0x1]  ;;  %s325_s3 = scalar_lea.vmem %s1084_s7, %s1206_s8 [#allocation4]  ;;  %v340_v12 = vrot.slane %v320_v8, 4  ;;  %v352_v13 = vsel %vm187_vm1, %v351_v10, %v334_v7  ;;  %s1236_s30 = sld [smem:[#allocation3 + $0x24]] }
  0x60   : > { %v326_v14 = vld [vmem:[%s325_s3] sm:$0x1]  ;;  %s328_s29 = scalar_lea.vmem %s1084_s7, %s1211_s10 [#allocation4]  ;;  %v343_v15 = vrot.slane %v323_v11, 3  ;;  %v353_v16 = vsel %vm189_vm2, %v352_v13, %v337_v9  ;;  %s1241_s4 = sld [smem:[#allocation3 + $0x25]] }
  0x61   : > { %v329_v17 = vld [vmem:[%s328_s29] sm:$0x1]  ;;  %v346_v18 = vrot.slane %v326_v14, 2  ;;  %v354_v19 = vsel %vm191_vm3, %v353_v16, %v340_v12  ;;  %s360_s5 = scalar_lea.vmem %s1084_s7, %s1216_s16 [#allocation4]  ;;  %s1246_s6 = sld [smem:[#allocation3 + $0x26]] }
  0x62   : > { %v349_v20 = vrot.slane %v329_v17, 1  ;;  %v355_v21 = vsel %vm193_vm4, %v354_v19, %v343_v15  ;;  %s363_s8 = scalar_lea.vmem %s1084_s7, %s1221_s22 [#allocation4]  ;;  %s1251_s9 = sld [smem:[#allocation3 + $0x27]]  ;;  %v361_v23 = vld [vmem:[%s360_s5] sm:$0x1] }
  0x63   : > { %v356_v22 = vsel %vm195_vm5, %v355_v21, %v346_v18  ;;  %v364_v24 = vld [vmem:[%s363_s8] sm:$0x1]  ;;  %s366_s10 = scalar_lea.vmem %s1084_s7, %s1226_s21 [#allocation4]  ;;  %s1256_s11 = sld [smem:[#allocation3 + $0x28]] }
  0x64   : > { %v357_v25 = vsel %vm197_vm6, %v356_v22, %v349_v20  ;;  %v367_v26 = vld [vmem:[%s366_s10] sm:$0x1]  ;;  %s369_s16 = scalar_lea.vmem %s1084_s7, %s1231_s27 [#allocation4]  ;;  %v384_v27 = vrot.slane %v364_v24, 7  ;;  %s1261_s18 = sld [smem:[#allocation3 + $0x29]] }
  0x65   : > { %358 = vst [vmem:[%s1141_s25 + $0x18] sm:$0xff] %v357_v25  ;;  %v370_v28 = vld [vmem:[%s369_s16] sm:$0x1]  ;;  %s372_s22 = scalar_lea.vmem %s1084_s7, %s1236_s30 [#allocation4]  ;;  %v387_v29 = vrot.slane %v367_v26, 6  ;;  %s1266_s19 = sld [smem:[#allocation3 + $0x2a]] }
  0x66   : > { %v373_v30 = vld [vmem:[%s372_s22] sm:$0x1]  ;;  %s375_s21 = scalar_lea.vmem %s1084_s7, %s1241_s4 [#allocation4]  ;;  %v390_v31 = vrot.slane %v370_v28, 5  ;;  %v404_v32 = vsel %vm185_vm0, %v361_v23, %v384_v27  ;;  %s1271_s26 = sld [smem:[#allocation3 + $0x2b]] }
  0x67   : > { %v376_v33 = vld [vmem:[%s375_s21] sm:$0x1]  ;;  %s378_s27 = scalar_lea.vmem %s1084_s7, %s1246_s6 [#allocation4]  ;;  %v393_v34 = vrot.slane %v373_v30, 4  ;;  %v405_v35 = vsel %vm187_vm1, %v404_v32, %v387_v29  ;;  %s1276_s3 = sld [smem:[#allocation3 + $0x2c]] }
  0x68   : > { %v379_v36 = vld [vmem:[%s378_s27] sm:$0x1]  ;;  %s381_s30 = scalar_lea.vmem %s1084_s7, %s1251_s9 [#allocation4]  ;;  %v396_v37 = vrot.slane %v376_v33, 3  ;;  %v406_v38 = vsel %vm189_vm2, %v405_v35, %v390_v31  ;;  %s1281_s29 = sld [smem:[#allocation3 + $0x2d]] }
  0x69   : > { %v382_v39 = vld [vmem:[%s381_s30] sm:$0x1]  ;;  %v399_v40 = vrot.slane %v379_v36, 2  ;;  %v407_v41 = vsel %vm191_vm3, %v406_v38, %v393_v34  ;;  %s413_s4 = scalar_lea.vmem %s1084_s7, %s1256_s11 [#allocation4]  ;;  %s1286_s5 = sld [smem:[#allocation3 + $0x2e]] }
  0x6a   : > { %v402_v42 = vrot.slane %v382_v39, 1  ;;  %v408_v43 = vsel %vm193_vm4, %v407_v41, %v396_v37  ;;  %s416_s6 = scalar_lea.vmem %s1084_s7, %s1261_s18 [#allocation4]  ;;  %s1291_s8 = sld [smem:[#allocation3 + $0x2f]]  ;;  %v414_v45 = vld [vmem:[%s413_s4] sm:$0x1] }
  0x6b   : > { %v409_v44 = vsel %vm195_vm5, %v408_v43, %v399_v40  ;;  %v417_v46 = vld [vmem:[%s416_s6] sm:$0x1]  ;;  %s419_s9 = scalar_lea.vmem %s1084_s7, %s1266_s19 [#allocation4]  ;;  %s1296_s10 = sld [smem:[#allocation3 + $0x30]] }
  0x6c   : > { %v410_v47 = vsel %vm197_vm6, %v409_v44, %v402_v42  ;;  %v420_v48 = vld [vmem:[%s419_s9] sm:$0x1]  ;;  %s422_s11 = scalar_lea.vmem %s1084_s7, %s1271_s26 [#allocation4]  ;;  %v437_v49 = vrot.slane %v417_v46, 7  ;;  %s1301_s16 = sld [smem:[#allocation3 + $0x31]] }
  0x6d   : > { %411 = vst [vmem:[%s1141_s25 + $0x20] sm:$0xff] %v410_v47  ;;  %v423_v50 = vld [vmem:[%s422_s11] sm:$0x1]  ;;  %s425_s18 = scalar_lea.vmem %s1084_s7, %s1276_s3 [#allocation4]  ;;  %v440_v51 = vrot.slane %v420_v48, 6  ;;  %s1306_s22 = sld [smem:[#allocation3 + $0x32]] }
  0x6e   : > { %v426_v52 = vld [vmem:[%s425_s18] sm:$0x1]  ;;  %s428_s19 = scalar_lea.vmem %s1084_s7, %s1281_s29 [#allocation4]  ;;  %v443_v53 = vrot.slane %v423_v50, 5  ;;  %v457_v54 = vsel %vm185_vm0, %v414_v45, %v437_v49  ;;  %s1311_s21 = sld [smem:[#allocation3 + $0x33]] }
  0x6f   : > { %v429_v55 = vld [vmem:[%s428_s19] sm:$0x1]  ;;  %s431_s26 = scalar_lea.vmem %s1084_s7, %s1286_s5 [#allocation4]  ;;  %v446_v56 = vrot.slane %v426_v52, 4  ;;  %v458_v57 = vsel %vm187_vm1, %v457_v54, %v440_v51  ;;  %s1316_s27 = sld [smem:[#allocation3 + $0x34]] }
  0x70   : > { %v432_v58 = vld [vmem:[%s431_s26] sm:$0x1]  ;;  %s434_s3 = scalar_lea.vmem %s1084_s7, %s1291_s8 [#allocation4]  ;;  %v449_v59 = vrot.slane %v429_v55, 3  ;;  %v459_v60 = vsel %vm189_vm2, %v458_v57, %v443_v53  ;;  %s1321_s30 = sld [smem:[#allocation3 + $0x35]] }
  0x71   : > { %v435_v61 = vld [vmem:[%s434_s3] sm:$0x1]  ;;  %v452_v62 = vrot.slane %v432_v58, 2  ;;  %v460_v63 = vsel %vm191_vm3, %v459_v60, %v446_v56  ;;  %s466_s29 = scalar_lea.vmem %s1084_s7, %s1296_s10 [#allocation4]  ;;  %s1326_s4 = sld [smem:[#allocation3 + $0x36]] }
  0x72   : > { %v455_v0 = vrot.slane %v435_v61, 1  ;;  %v461_v1 = vsel %vm193_vm4, %v460_v63, %v449_v59  ;;  %s469_s5 = scalar_lea.vmem %s1084_s7, %s1301_s16 [#allocation4]  ;;  %s1331_s6 = sld [smem:[#allocation3 + $0x37]]  ;;  %v467_v3 = vld [vmem:[%s466_s29] sm:$0x1] }
  0x73   : > { %v462_v2 = vsel %vm195_vm5, %v461_v1, %v452_v62  ;;  %v470_v4 = vld [vmem:[%s469_s5] sm:$0x1]  ;;  %s472_s8 = scalar_lea.vmem %s1084_s7, %s1306_s22 [#allocation4]  ;;  %s1336_s9 = sld [smem:[#allocation3 + $0x38]] }
  0x74   : > { %v463_v5 = vsel %vm197_vm6, %v462_v2, %v455_v0  ;;  %v473_v6 = vld [vmem:[%s472_s8] sm:$0x1]  ;;  %s475_s10 = scalar_lea.vmem %s1084_s7, %s1311_s21 [#allocation4]  ;;  %v490_v7 = vrot.slane %v470_v4, 7  ;;  %s1341_s11 = sld [smem:[#allocation3 + $0x39]] }
  0x75   : > { %464 = vst [vmem:[%s1141_s25 + $0x28] sm:$0xff] %v463_v5  ;;  %v476_v8 = vld [vmem:[%s475_s10] sm:$0x1]  ;;  %s478_s16 = scalar_lea.vmem %s1084_s7, %s1316_s27 [#allocation4]  ;;  %v493_v9 = vrot.slane %v473_v6, 6  ;;  %s1346_s18 = sld [smem:[#allocation3 + $0x3a]] }
  0x76   : > { %v479_v10 = vld [vmem:[%s478_s16] sm:$0x1]  ;;  %s481_s22 = scalar_lea.vmem %s1084_s7, %s1321_s30 [#allocation4]  ;;  %v496_v11 = vrot.slane %v476_v8, 5  ;;  %v510_v12 = vsel %vm185_vm0, %v467_v3, %v490_v7  ;;  %s1351_s19 = sld [smem:[#allocation3 + $0x3b]] }
  0x77   : > { %v482_v13 = vld [vmem:[%s481_s22] sm:$0x1]  ;;  %s484_s21 = scalar_lea.vmem %s1084_s7, %s1326_s4 [#allocation4]  ;;  %v499_v14 = vrot.slane %v479_v10, 4  ;;  %v511_v15 = vsel %vm187_vm1, %v510_v12, %v493_v9  ;;  %s790_s26 = sld [smem:[#allocation3 + $0x3c]] }
  0x78   : > { %v485_v16 = vld [vmem:[%s484_s21] sm:$0x1]  ;;  %s487_s27 = scalar_lea.vmem %s1084_s7, %s1331_s6 [#allocation4]  ;;  %v502_v17 = vrot.slane %v482_v13, 3  ;;  %v512_v18 = vsel %vm189_vm2, %v511_v15, %v496_v11  ;;  %s791_s3 = sld [smem:[#allocation3 + $0x3d]] }
  0x79   : > { %v488_v19 = vld [vmem:[%s487_s27] sm:$0x1]  ;;  %v505_v20 = vrot.slane %v485_v16, 2  ;;  %v513_v21 = vsel %vm191_vm3, %v512_v18, %v499_v14  ;;  %s519_s30 = scalar_lea.vmem %s1084_s7, %s1336_s9 [#allocation4]  ;;  %s792_s29 = sld [smem:[#allocation3 + $0x3e]] }
  0x7a   : > { %v508_v22 = vrot.slane %v488_v19, 1  ;;  %v514_v23 = vsel %vm193_vm4, %v513_v21, %v502_v17  ;;  %s522_s4 = scalar_lea.vmem %s1084_s7, %s1341_s11 [#allocation4]  ;;  %s793_s5 = sld [smem:[#allocation3 + $0x3f]]  ;;  %v520_v25 = vld [vmem:[%s519_s30] sm:$0x1] }
  0x7b   : > { %v515_v24 = vsel %vm195_vm5, %v514_v23, %v505_v20  ;;  %v523_v26 = vld [vmem:[%s522_s4] sm:$0x1]  ;;  %s525_s6 = scalar_lea.vmem %s1084_s7, %s1346_s18 [#allocation4]  ;;  %s585_s10 = sshll.u32 %s1141_s25, 4  ;;  %s1381_s10 = int_to_ptr.vmem [resolvable:$true] %s585_s10 }
  0x7c   : > { %v516_v27 = vsel %vm197_vm6, %v515_v24, %v508_v22  ;;  %v526_v28 = vld [vmem:[%s525_s6] sm:$0x1]  ;;  %s528_s8 = scalar_lea.vmem %s1084_s7, %s1351_s19 [#allocation4]  ;;  %v543_v29 = vrot.slane %v523_v26, 7  ;;  %s800_s18 = sshll.u32 %s1002_s0, 10 }
  0x7d   : > { %517 = vst [vmem:[%s1141_s25 + $0x30] sm:$0xff] %v516_v27  ;;  %v529_v30 = vld [vmem:[%s528_s8] sm:$0x1]  ;;  %s531_s9 = scalar_lea.vmem %s1084_s7, %s790_s26 [#allocation4]  ;;  %v546_v31 = vrot.slane %v526_v28, 6  ;;  %s572_s21 = scalar_lea.sflag [#allocation6], %s1078_s28 }
  0x7e   : > { %v532_v32 = vld [vmem:[%s531_s9] sm:$0x1]  ;;  %s534_s11 = scalar_lea.vmem %s1084_s7, %s791_s3 [#allocation4]  ;;  %v549_v33 = vrot.slane %v529_v30, 5  ;;  %v563_v34 = vsel %vm185_vm0, %v520_v25, %v543_v29  ;;  %s888_s26 = scalar_lea.vmem %s1381_s10, 1024 }
  0x7f   : > { %v535_v35 = vld [vmem:[%s534_s11] sm:$0x1]  ;;  %s537_s16 = scalar_lea.vmem %s1084_s7, %s792_s29 [#allocation4]  ;;  %v552_v36 = vrot.slane %v532_v32, 4  ;;  %v564_v37 = vsel %vm187_vm1, %v563_v34, %v546_v31  ;;  %p889_p11 = scmp.ne.s32.totalorder %s1381_s10, %s888_s26 }
  0x80   : > { %v538_v38 = vld [vmem:[%s537_s16] sm:$0x1]  ;;  %s540_s22 = scalar_lea.vmem %s1084_s7, %s793_s5 [#allocation4]  ;;  %v555_v39 = vrot.slane %v535_v35, 3  ;;  %v565_v40 = vsel %vm189_vm2, %v564_v37, %v549_v33  ;;  %s1388_s7 = scalar_lea.hbm %s1436_s2, %s800_s18 }
  0x81   : > { %v541_v41 = vld [vmem:[%s540_s22] sm:$0x1]  ;;  %v558_v42 = vrot.slane %v538_v38, 2  ;;  %v566_v43 = vsel %vm191_vm3, %v565_v40, %v552_v36  ;;  %p890_p13 = pnand %p889_p11, %p1445_p12  ;;  %s960_s27 = smov [#allocation7]  }
  0x82   : > { %v561_v44 = vrot.slane %v541_v41, 1  ;;  %v567_v45 = vsel %vm193_vm4, %v566_v43, %v555_v39  ;;  %s892_s3 = sshll.u32 %s960_s27, 4  ;;  %s893_s3 = int_to_ptr.vmem [resolvable:$false] %s892_s3 }
  0x83   : > { %v568_v46 = vsel %vm195_vm5, %v567_v45, %v558_v42  ;;  %p891_p4 = pneg %p890_p13  ;;  %s894_s30 = scalar_lea.vmem %s893_s3, 2048 }
  0x84   : > { %v569_v47 = vsel %vm197_vm6, %v568_v46, %v561_v44  ;;  %p895_p5 = scmp.lt.s32.totalorder %s1381_s10, %s893_s3  ;;  %p896_p7 = scmp.lt.s32.totalorder %s894_s30, %s888_s26 }
  0x85   : > { %570 = vst [vmem:[%s1141_s25 + $0x38] sm:$0xff] %v569_v47 }
  0x86   : > { %p897_p8 = por %p896_p7, %p895_p5 }
  0x88   : > { %p898_p10 = pnand %p897_p8, %p891_p4 }
  0x8a   : > { %901 = shalt.err (!%p898_p10)
}
  0x8b   : > { %s902_s25 = scalar_lea.hbm %s1388_s7, 1024  ;;  %s906_s5 = scalar_lea.hbm %s1436_s2, 2048 }
  0x8c   : > { %p903_p0 = scmp.ne.s32.totalorder %s1388_s7, %s902_s25  ;;  %p907_p1 = scmp.lt.s32.totalorder %s1388_s7, %s1436_s2 }
  0x8d   : > { %p908_p3 = scmp.lt.s32.totalorder %s906_s5, %s902_s25 }
  0x8e   : > { %p904_p2 = pnand %p903_p0, %p1445_p12 }
  0x8f   : > { %p909_p6 = por %p908_p3, %p907_p1 }
  0x90   : > { %p905_p9 = pneg %p904_p2 }
  0x92   : > { %p910_p11 = pnand %p909_p6, %p905_p9 }
  0x94   : > { %913 = shalt.err (!%p910_p11)
}
  0x95   : > { %s961_s9 = smov 128   ;;  %s962_s11 = smov 8  }
  0x96   : > { %803 = dma.vmem_to_hbm [thread:$0]  (%p1445_p12), %s1381_s10, 1024, %s1388_s7, %s572_s21, %s961_s9, %s961_s9, %s962_s11  }
  0x97 PF: > { %s600_s16 = sand.u32 1, %s942_s12   ;;  %p1446_p13 = scmp.ne.s32.totalorder %s1442_s24, 0 }
  0x98   : > { %p1447_p4 = scmp.ge.s32.totalorder %s954_s15, 2  ;;  %s601_s18 = scalar_lea.sflag [#allocation6], %s600_s16 }
  0x9a   : > { %p810_p5 = pnand %p1447_p4, %p1446_p13 }
  0x9c   : > { %p811_p7 = pneg %p810_p5 }
  0x9e   : > { %937 = dma.done.wait (%p811_p7), %s601_s18, 1024  }
  0x9f   : > { %939 = vsyncadd (%p811_p7), %s601_s18, 4294966272  ;;  %p19_p8 = scmp.ge.s32.totalorder %s1006_s17, 4   ;;  %s1448_s12 = smov %s946_s13 }
  0xa0   : > { %s1449_s13 = smov %s950_s14  ;;  %s1450_s14 = smov %s1018_s20 }
  0xa1   : > { %s1451_s15 = smov %s1006_s17  ;;  %21 = sbr.rel (!%p19_p8) target bundleno = 10 (0xa), region = 133 }
  0xa6   :  { %606 = vsyncpa [#allocation5], 1 }
  0xa7   :  { %608 = vsyncpa [#allocation5 + $0x1], 1 }
  0xa8   :  { %609 = vsyncpa [#allocation6], 1 }
  0xa9   :  { %611 = vsyncpa [#allocation6 + $0x1], 1 }

</bundles_post_ra>
